<compile_context>
chip_gen: v7x
topology: tpu7x:2x2x1
jax: 0.10.0
libtpu: 0.0.40
codegen_flags: <defaults>
</compile_context>

<pallas_src>
import functools
import math

import numpy as np

import jax
import jax.numpy as jnp
from jax.experimental import pallas as pl
from jax.experimental.pallas import tpu as pltpu


_VMEM_LIMIT = 32 * 1024 * 1024   # safe on every generation (v7x physical = 64 MiB)
_LANE = 128


def _round_up(n, m):
    return (n + m - 1) // m * m


def _pick_tile_m(m):
    # Largest row tile <= 512 that divides M exactly: no A padding, big enough
    # to amortize per-grid-step overhead and keep the MXU fed.
    for t in (512, 384, 256, 128, 64, 32, 16, 8):
        if m % t == 0:
            return t
    return m


# ------------------------------------------------------------------ kernels --

def _bn_relu_matmul_kernel(x_ref, scale_ref, shift_ref, w_ref, b_ref, o_ref, *,
                           relu):
    """Fused BN affine (+ optional ReLU) + matmul:  max(x*s+t, 0) @ W + b."""
    a = x_ref[...].astype(jnp.float32) * scale_ref[...] + shift_ref[...]
    if relu:
        a = jnp.maximum(a, 0.0)
    acc = jnp.dot(a.astype(w_ref.dtype), w_ref[...],
                  preferred_element_type=jnp.float32)
    o_ref[...] = (acc + b_ref[...]).astype(o_ref.dtype)


def _bn_relu_conv_taps_kernel(*refs, kh, kw, pad, h_in, w_in, w_out):
    """Fused BN + ReLU + kxk (stride-1) conv for one (image, out-row) step.

    kh vertical taps arrive as kh row BlockSpecs of the spatially padded NHWC
    activation; the kw horizontal taps are static slices in VMEM.  The kh*kw
    partial (w_out, C) @ (C, n_out) products accumulate in f32 -- no im2col
    matrix ever touches HBM.
    """
    taps = refs[:kh]
    scale_ref, shift_ref, w_ref, b_ref, o_ref = refs[kh:]
    h0 = pl.program_id(1)
    scale = scale_ref[...]
    shift = shift_ref[...]
    wp = w_in + 2 * pad
    n_out = o_ref.shape[-1]
    # The conv's zero padding is applied *after* BN+ReLU in the reference
    # module, so padded positions must stay exactly zero -> positional mask.
    col = jax.lax.broadcasted_iota(jnp.int32, (wp, 1), 0)
    col_ok = jnp.logical_and(col >= pad, col < pad + w_in)
    acc = jnp.zeros((w_out, n_out), jnp.float32)
    for i in range(kh):
        row = taps[i][0, 0].astype(jnp.float32)                 # (wp, C)
        a = jnp.maximum(row * scale + shift, 0.0)               # BN + ReLU
        row_ok = jnp.logical_and(h0 + i >= pad, h0 + i < pad + h_in)
        a = jnp.where(jnp.logical_and(col_ok, row_ok), a, 0.0)
        a = a.astype(w_ref.dtype)
        for j in range(kw):
            acc = acc + jnp.dot(a[j:j + w_out, :], w_ref[i * kw + j],
                                preferred_element_type=jnp.float32)
    o_ref[0, 0] = (acc + b_ref[...]).astype(o_ref.dtype)


def _bn_relu_kernel(x_ref, scale_ref, shift_ref, o_ref):
    """Tiled standalone BN affine + ReLU (only used for the final BN)."""
    a = x_ref[...].astype(jnp.float32) * scale_ref[...] + shift_ref[...]
    o_ref[...] = jnp.maximum(a, 0.0).astype(o_ref.dtype)


# ----------------------------------------------------------------- wrappers --

def _bn_scale_shift(x, gamma, beta, eps=1e-5):
    """BatchNorm batch statistics (PyTorch training-mode forward): one pass,
    var = E[x^2] - mean^2 (biased), f32 accumulation."""
    c = x.shape[-1]
    xf = x.reshape(-1, c)
    n = xf.shape[0]
    s1 = jnp.sum(xf, axis=0, dtype=jnp.float32)
    s2 = jnp.sum(jnp.square(xf.astype(jnp.float32)), axis=0)
    mean = s1 / n
    var = jnp.maximum(s2 / n - jnp.square(mean), 0.0)
    scale = gamma / jnp.sqrt(var + eps)
    shift = beta - mean * scale
    return scale.reshape(1, c), shift.reshape(1, c)


def _conv1x1_fused(x, scale, shift, w_pad, b_pad, out_ch, *, relu=True,
                   out_dtype=None):
    """BN + ReLU + 1x1 conv (or dense layer): pure (M, C) reshape, no im2col."""
    lead = x.shape[:-1]
    c = x.shape[-1]
    m = int(np.prod(lead))
    n_pad = w_pad.shape[-1]
    tile_m = _pick_tile_m(m)
    out_dtype = x.dtype if out_dtype is None else out_dtype
    out = pl.pallas_call(
        functools.partial(_bn_relu_matmul_kernel, relu=relu),
        out_shape=jax.ShapeDtypeStruct((m, n_pad), out_dtype),
        grid=(m // tile_m,),
        in_specs=[
            pl.BlockSpec((tile_m, c), lambda i: (i, 0)),
            pl.BlockSpec((1, c), lambda i: (0, 0)),
            pl.BlockSpec((1, c), lambda i: (0, 0)),
            pl.BlockSpec((c, n_pad), lambda i: (0, 0)),   # resident weight
            pl.BlockSpec((1, n_pad), lambda i: (0, 0)),
        ],
        out_specs=pl.BlockSpec((tile_m, n_pad), lambda i: (i, 0)),
        compiler_params=pltpu.CompilerParams(
            dimension_semantics=("parallel",),
            vmem_limit_bytes=_VMEM_LIMIT),
    )(x.reshape(m, c), scale, shift, w_pad, b_pad)
    if out_ch != n_pad:
        out = out[:, :out_ch]            # drop lane padding
    return out.reshape(lead + (out_ch,))


def _conv_kxk_fused(x, scale, shift, w_pad, b_pad, out_ch, *, ksize, padding,
                    cpad):
    """BN + ReLU + kxk stride-1 conv without materializing im2col in HBM."""
    n, h, w, c = x.shape
    kh = kw = ksize
    ho = h + 2 * padding - kh + 1
    wo = w + 2 * padding - kw + 1
    wp = w + 2 * padding
    n_pad = w_pad.shape[-1]
    # One cheap spatial (+channel-alignment) zero pad instead of a kh*kw times
    # larger im2col matrix.
    x = jnp.pad(x, ((0, 0), (padding, padding), (padding, padding),
                    (0, cpad - c)))
    if cpad != c:
        scale = jnp.pad(scale, ((0, 0), (0, cpad - c)))
        shift = jnp.pad(shift, ((0, 0), (0, cpad - c)))
    kernel = functools.partial(_bn_relu_conv_taps_kernel, kh=kh, kw=kw,
                               pad=padding, h_in=h, w_in=w, w_out=wo)
    tap_specs = [
        pl.BlockSpec((1, 1, wp, cpad), lambda ni, hi, i=i: (ni, hi + i, 0, 0))
        for i in range(kh)
    ]
    # TODO(synk): per-step matmul rows = output width; blocking several output
    # rows per grid step (element-offset BlockSpecs) would fill the MXU better
    # at large spatial sizes.
    out = pl.pallas_call(
        kernel,
        out_shape=jax.ShapeDtypeStruct((n, ho, wo, n_pad), x.dtype),
        grid=(n, ho),
        in_specs=tap_specs + [
            pl.BlockSpec((1, cpad), lambda ni, hi: (0, 0)),
            pl.BlockSpec((1, cpad), lambda ni, hi: (0, 0)),
            pl.BlockSpec((kh * kw, cpad, n_pad), lambda ni, hi: (0, 0, 0)),
            pl.BlockSpec((1, n_pad), lambda ni, hi: (0, 0)),
        ],
        out_specs=pl.BlockSpec((1, 1, wo, n_pad),
                               lambda ni, hi: (ni, hi, 0, 0)),
        compiler_params=pltpu.CompilerParams(
            dimension_semantics=("parallel", "parallel"),
            vmem_limit_bytes=_VMEM_LIMIT),
    )(*([x] * kh), scale, shift, w_pad, b_pad)
    if out_ch != n_pad:
        out = out[..., :out_ch]
    return out


def _bn_relu_tiled(x, scale, shift):
    lead = x.shape[:-1]
    c = x.shape[-1]
    m = int(np.prod(lead))
    tile_m = _pick_tile_m(m)
    y = pl.pallas_call(
        _bn_relu_kernel,
        out_shape=jax.ShapeDtypeStruct((m, c), x.dtype),
        grid=(m // tile_m,),
        in_specs=[pl.BlockSpec((tile_m, c), lambda i: (i, 0)),
                  pl.BlockSpec((1, c), lambda i: (0, 0)),
                  pl.BlockSpec((1, c), lambda i: (0, 0))],
        out_specs=pl.BlockSpec((tile_m, c), lambda i: (i, 0)),
        compiler_params=pltpu.CompilerParams(
            dimension_semantics=("parallel",),
            vmem_limit_bytes=_VMEM_LIMIT),
    )(x.reshape(m, c), scale, shift)
    return y.reshape(x.shape)


# ------------------------------------------------------------ param packing --

def make_basic_conv_params(gamma, beta, w, b, padding=0):
    """Pack PyTorch-layout (O, I, kh, kw) conv + BN params for the kernels."""
    out_ch, in_ch, kh, kw = w.shape
    n_pad = _round_up(out_ch, _LANE)            # lane-dense output columns
    p = {
        'ksize': kh,
        'padding': padding,
        'in_ch': in_ch,
        'out_ch': out_ch,
        'gamma': jnp.asarray(gamma, jnp.float32),
        'beta': jnp.asarray(beta, jnp.float32),
        'b': jnp.asarray(np.pad(b, (0, n_pad - out_ch))[None, :], jnp.float32),
    }
    if kh == 1:
        wm = np.pad(w.reshape(out_ch, in_ch).T, ((0, 0), (0, n_pad - out_ch)))
        p['w'] = jnp.asarray(wm, jnp.bfloat16)
        p['cpad'] = in_ch
    else:
        cpad = _round_up(in_ch, 8)              # sublane-align tiny C (stem)
        wm = np.transpose(w, (2, 3, 1, 0)).reshape(kh * kw, in_ch, out_ch)
        wm = np.pad(wm, ((0, 0), (0, cpad - in_ch), (0, n_pad - out_ch)))
        p['w'] = jnp.asarray(wm, jnp.bfloat16)
        p['cpad'] = cpad
    return p


# ----------------------------------------------------------------- model fwd --

def basic_conv2d_nhwc(x, p):
    """BasicConv2d: BatchNorm2d(batch stats) -> ReLU -> Conv2d, fully fused."""
    scale, shift = _bn_scale_shift(x, p['gamma'], p['beta'])
    if p['ksize'] == 1:
        return _conv1x1_fused(x, scale, shift, p['w'], p['b'], p['out_ch'])
    return _conv_kxk_fused(x, scale, shift, p['w'], p['b'], p['out_ch'],
                           ksize=p['ksize'], padding=p['padding'],
                           cpad=p['cpad'])


def bottleneck_nhwc(x, p):
    left = basic_conv2d_nhwc(x, p['c1'])
    left = basic_conv2d_nhwc(left, p['c3'])
    return jnp.concatenate([x, left], axis=-1)


def transition_nhwc(x, p):
    x = basic_conv2d_nhwc(x, p)
    n, h, w, c = x.shape
    # TODO(synk): the 2x2 avg-pool and the BN batch-statistic reductions stay
    # as thin XLA glue (single fused memory-bound passes), not Pallas kernels.
    x = x.reshape(n, h // 2, 2, w // 2, 2, c)
    return jnp.mean(x, axis=(2, 4), dtype=jnp.float32).astype(jnp.bfloat16)


def densenet121_forward(x_nchw, params):
    # single NCHW -> NHWC conversion; everything downstream stays NHWC / (M,C)
    x = jnp.transpose(x_nchw, (0, 2, 3, 1)).astype(jnp.bfloat16)
    x = basic_conv2d_nhwc(x, params['pre'])
    for bi, blk in enumerate(params['blocks']):
        for bp in blk:
            x = bottleneck_nhwc(x, bp)
        if bi < len(params['transitions']):
            x = transition_nhwc(x, params['transitions'][bi])
    scale, shift = _bn_scale_shift(x, params['bn_gamma'], params['bn_beta'])
    x = _bn_relu_tiled(x, scale, shift)
    n, h, w, c = x.shape
    x = jnp.mean(x.reshape(n, h * w, c), axis=1, dtype=jnp.float32)  # 4x4 pool
    feat = x.astype(jnp.bfloat16)
    ones = jnp.ones((1, c), jnp.float32)
    zeros = jnp.zeros((1, c), jnp.float32)
    logits = _conv1x1_fused(feat, ones, zeros, params['fc_w'], params['fc_b'],
                            params['num_classes'], relu=False,
                            out_dtype=jnp.float32)
    return logits


def init_densenet121_params(seed=0, k=32, theta=0.5, num_classes=10):
    rng = np.random.RandomState(seed)

    def conv_block(ksize, in_ch, out_ch):
        fan_in = in_ch * ksize * ksize
        bound = 1.0 / math.sqrt(fan_in)
        w = rng.uniform(-bound, bound,
                        (out_ch, in_ch, ksize, ksize)).astype(np.float32)
        b = rng.uniform(-bound, bound, (out_ch,)).astype(np.float32)
        gamma = np.ones((in_ch,), np.float32)        # fresh nn.BatchNorm2d
        beta = np.zeros((in_ch,), np.float32)
        return make_basic_conv_params(gamma, beta, w, b,
                                      padding=1 if ksize == 3 else 0)

    params = {'pre': conv_block(3, 3, 2 * k), 'blocks': [], 'transitions': []}
    ch = 2 * k
    for bi, layernum in enumerate((6, 12, 24, 16)):
        blk = []
        for _ in range(layernum):
            blk.append({'c1': conv_block(1, ch, 4 * k),
                        'c3': conv_block(3, 4 * k, k)})
            ch += k
        params['blocks'].append(blk)
        if bi < 3:
            t_out = int(math.floor(theta * ch))
            params['transitions'].append(conv_block(1, ch, t_out))
            ch = t_out
    params['bn_gamma'] = jnp.ones((ch,), jnp.float32)
    params['bn_beta'] = jnp.zeros((ch,), jnp.float32)
    bound = 1.0 / math.sqrt(ch)
    fw = rng.uniform(-bound, bound, (num_classes, ch)).astype(np.float32)
    fb = rng.uniform(-bound, bound, (num_classes,)).astype(np.float32)
    n_pad = _round_up(num_classes, _LANE)
    params['fc_w'] = jnp.asarray(
        np.pad(fw.T, ((0, 0), (0, n_pad - num_classes))), jnp.bfloat16)
    params['fc_b'] = jnp.asarray(
        np.pad(fb, (0, n_pad - num_classes))[None, :], jnp.float32)
    params['num_classes'] = num_classes
    return params


# -------------------------------------------------------------------- checks --

def _check_basic_conv(*, ksize, in_ch, out_ch, hw, padding, seed=0):
    rng = np.random.RandomState(seed)
    batch = 2
    x = rng.randn(batch, hw, hw, in_ch).astype(np.float32)
    gamma = (1.0 + 0.1 * rng.randn(in_ch)).astype(np.float32)
    beta = (0.1 * rng.randn(in_ch)).astype(np.float32)
    fan_in = in_ch * ksize * ksize
    bound = 1.0 / math.sqrt(fan_in)
    w = rng.uniform(-bound, bound,
                    (out_ch, in_ch, ksize, ksize)).astype(np.float32)
    b = rng.uniform(-bound, bound, (out_ch,)).astype(np.float32)

    p = make_basic_conv_params(gamma, beta, w, b, padding=padding)
    x_bf = jnp.asarray(x, jnp.bfloat16)
    got = np.asarray(basic_conv2d_nhwc(x_bf, p).astype(jnp.float32))

    # XLA f32 reference on the same bf16-rounded activation / weights.
    xr = np.asarray(x_bf.astype(jnp.float32))
    mean = xr.mean(axis=(0, 1, 2))
    var = ((xr - mean) ** 2).mean(axis=(0, 1, 2))
    act = np.maximum((xr - mean) / np.sqrt(var + 1e-5) * gamma + beta, 0.0)
    wr = np.asarray(jnp.asarray(w, jnp.bfloat16).astype(jnp.float32))
    ref = jax.lax.conv_general_dilated(
        jnp.asarray(act), jnp.asarray(np.transpose(wr, (2, 3, 1, 0))),
        window_strides=(1, 1), padding=[(padding, padding)] * 2,
        dimension_numbers=("NHWC", "HWIO", "NHWC")) + b
    ref = np.asarray(ref)
    assert got.shape == ref.shape, (got.shape, ref.shape)
    err = float(np.max(np.abs(got - ref)))
    assert err < 5e-2, f"fused BasicConv2d mismatch: max |err| = {err}"


if __name__ == "__main__":
    # Unit checks of the fused BN+ReLU+Conv kernels (3x3 tap path including the
    # small-channel stem case, and the 1x1 / matmul path).
    _check_basic_conv(ksize=3, in_ch=4, out_ch=8, hw=16, padding=1)
    _check_basic_conv(ksize=1, in_ch=8, out_ch=16, hw=16, padding=0)

    # Full DenseNet121 forward.  Input spatial size 32 is implied by the model
    # tail (3 transitions halving 32 -> 4, then AvgPool2d((4,4)) -> 1x1).
    params = init_densenet121_params(seed=0)
    x = jax.random.normal(jax.random.PRNGKey(0), (2, 3, 32, 32),
                          dtype=jnp.float32)
    fwd = jax.jit(lambda inp: densenet121_forward(inp, params))
    logits = jax.block_until_ready(fwd(x))
    assert logits.shape == (2, 10), logits.shape
    assert bool(jnp.all(jnp.isfinite(logits)))
    print("KERNEL_OK")
</pallas_src>

<mosaic_0001>
module attributes {stable_mosaic.version = 11 : i64} {
  func.func @_bn_relu_conv_taps_kernel(%arg0: i32, %arg1: i32, %arg2: memref<1x1x18x8xbf16, #tpu.memory_space<vmem>>, %arg3: memref<1x1x18x8xbf16, #tpu.memory_space<vmem>>, %arg4: memref<1x1x18x8xbf16, #tpu.memory_space<vmem>>, %arg5: memref<1x8xf32, #tpu.memory_space<vmem>>, %arg6: memref<1x8xf32, #tpu.memory_space<vmem>>, %arg7: memref<9x8x128xbf16, #tpu.memory_space<vmem>>, %arg8: memref<1x128xf32, #tpu.memory_space<vmem>>, %arg9: memref<1x1x16x128xbf16, #tpu.memory_space<vmem>>) attributes {dimension_semantics = [#tpu.dimension_semantics<parallel>, #tpu.dimension_semantics<parallel>], iteration_bounds = array<i64: 2, 16>, scalar_prefetch = 0 : i64, scratch_operands = 0 : i64, tpu.core_type = #tpu.core_type<tc>, window_params = [{transform_indices = @transform_0, window_bounds = array<i64: 1, 1, 18, 8>}, {transform_indices = @transform_1, window_bounds = array<i64: 1, 1, 18, 8>}, {transform_indices = @transform_2, window_bounds = array<i64: 1, 1, 18, 8>}, {pipeline_mode = #tpu.pipeline_mode<synchronous>, transform_indices = @transform_3, window_bounds = array<i64: 1, 8>}, {pipeline_mode = #tpu.pipeline_mode<synchronous>, transform_indices = @transform_4, window_bounds = array<i64: 1, 8>}, {pipeline_mode = #tpu.pipeline_mode<synchronous>, transform_indices = @transform_5, window_bounds = array<i64: 9, 8, 128>}, {pipeline_mode = #tpu.pipeline_mode<synchronous>, transform_indices = @transform_6, window_bounds = array<i64: 1, 128>}, {transform_indices = @transform_7, window_bounds = array<i64: 1, 1, 16, 128>}]} {
    %c0 = arith.constant 0 : index
    %c0_0 = arith.constant 0 : index
    %0 = vector.load %arg5[%c0, %c0_0] : memref<1x8xf32, #tpu.memory_space<vmem>>, vector<1x8xf32>
    %c0_1 = arith.constant 0 : index
    %c0_2 = arith.constant 0 : index
    %1 = vector.load %arg6[%c0_1, %c0_2] : memref<1x8xf32, #tpu.memory_space<vmem>>, vector<1x8xf32>
    %2 = tpu.iota {dimensions = array<i32: 0>} : vector<18x1xi32>
    %c1_i32 = arith.constant 1 : i32
    %3 = vector.broadcast %c1_i32 : i32 to vector<18x1xi32>
    %4 = arith.cmpi sge, %2, %3 : vector<18x1xi32>
    %c17_i32 = arith.constant 17 : i32
    %5 = vector.broadcast %c17_i32 : i32 to vector<18x1xi32>
    %6 = arith.cmpi slt, %2, %5 : vector<18x1xi32>
    %7 = arith.andi %4, %6 : vector<18x1xi1>
    %cst = arith.constant 0.000000e+00 : f32
    %8 = vector.broadcast %cst : f32 to vector<16x128xf32>
    %c0_3 = arith.constant 0 : index
    %c0_4 = arith.constant 0 : index
    %c0_5 = arith.constant 0 : index
    %c0_6 = arith.constant 0 : index
    %9 = vector.load %arg2[%c0_3, %c0_4, %c0_5, %c0_6] : memref<1x1x18x8xbf16, #tpu.memory_space<vmem>>, vector<1x1x18x8xbf16>
    %10 = vector.shape_cast %9 : vector<1x1x18x8xbf16> to vector<18x8xbf16>
    %11 = arith.extf %10 : vector<18x8xbf16> to vector<18x8xf32>
    %12 = vector.broadcast %0 : vector<1x8xf32> to vector<18x8xf32>
    %13 = arith.mulf %11, %12 : vector<18x8xf32>
    %14 = vector.broadcast %1 : vector<1x8xf32> to vector<18x8xf32>
    %15 = arith.addf %13, %14 : vector<18x8xf32>
    %cst_7 = arith.constant 0.000000e+00 : f32
    %16 = vector.broadcast %cst_7 : f32 to vector<18x8xf32>
    %17 = arith.maximumf %15, %16 : vector<18x8xf32>
    %c0_i32 = arith.constant 0 : i32
    %18 = arith.addi %arg1, %c0_i32 : i32
    %c1_i32_8 = arith.constant 1 : i32
    %19 = arith.cmpi sge, %18, %c1_i32_8 : i32
    %c0_i32_9 = arith.constant 0 : i32
    %20 = arith.addi %arg1, %c0_i32_9 : i32
    %c17_i32_10 = arith.constant 17 : i32
    %21 = arith.cmpi slt, %20, %c17_i32_10 : i32
    %22 = arith.andi %19, %21 : i1
    %23 = vector.broadcast %22 : i1 to vector<18x1xi1>
    %24 = arith.andi %7, %23 : vector<18x1xi1>
    %cst_11 = arith.constant 0.000000e+00 : f32
    %25 = vector.shape_cast %24 : vector<18x1xi1> to vector<18x1xi1>
    %26 = vector.broadcast %25 : vector<18x1xi1> to vector<18x8xi1>
    %27 = vector.broadcast %cst_11 : f32 to vector<18x8xf32>
    %28 = arith.select %26, %17, %27 : vector<18x8xi1>, vector<18x8xf32>
    %29 = arith.truncf %28 : vector<18x8xf32> to vector<18x8xbf16>
    %30 = vector.extract_strided_slice %29 {offsets = [0, 0], sizes = [16, 8], strides = [1, 1]} : vector<18x8xbf16> to vector<16x8xbf16>
    %c0_12 = arith.constant 0 : index
    %c0_13 = arith.constant 0 : index
    %c0_14 = arith.constant 0 : index
    %31 = vector.load %arg7[%c0_12, %c0_13, %c0_14] : memref<9x8x128xbf16, #tpu.memory_space<vmem>>, vector<1x8x128xbf16>
    %32 = vector.shape_cast %31 : vector<1x8x128xbf16> to vector<8x128xbf16>
    %cst_15 = arith.constant dense<0.000000e+00> : vector<16x128xf32>
    %33 = tpu.matmul %30, %32, %cst_15 {dimension_numbers = #tpu.dot_dimension_numbers<[1], [0], [0], [1], [0, 0, 1, 1], [], []>} : vector<16x8xbf16>, vector<8x128xbf16>, vector<16x128xf32> -> vector<16x128xf32>
    %34 = arith.addf %8, %33 : vector<16x128xf32>
    %35 = vector.extract_strided_slice %29 {offsets = [1, 0], sizes = [16, 8], strides = [1, 1]} : vector<18x8xbf16> to vector<16x8xbf16>
    %c1 = arith.constant 1 : index
    %c0_16 = arith.constant 0 : index
    %c0_17 = arith.constant 0 : index
    %36 = vector.load %arg7[%c1, %c0_16, %c0_17] : memref<9x8x128xbf16, #tpu.memory_space<vmem>>, vector<1x8x128xbf16>
    %37 = vector.shape_cast %36 : vector<1x8x128xbf16> to vector<8x128xbf16>
    %cst_18 = arith.constant dense<0.000000e+00> : vector<16x128xf32>
    %38 = tpu.matmul %35, %37, %cst_18 {dimension_numbers = #tpu.dot_dimension_numbers<[1], [0], [0], [1], [0, 0, 1, 1], [], []>} : vector<16x8xbf16>, vector<8x128xbf16>, vector<16x128xf32> -> vector<16x128xf32>
    %39 = arith.addf %34, %38 : vector<16x128xf32>
    %40 = vector.extract_strided_slice %29 {offsets = [2, 0], sizes = [16, 8], strides = [1, 1]} : vector<18x8xbf16> to vector<16x8xbf16>
    %c2 = arith.constant 2 : index
    %c0_19 = arith.constant 0 : index
    %c0_20 = arith.constant 0 : index
    %41 = vector.load %arg7[%c2, %c0_19, %c0_20] : memref<9x8x128xbf16, #tpu.memory_space<vmem>>, vector<1x8x128xbf16>
    %42 = vector.shape_cast %41 : vector<1x8x128xbf16> to vector<8x128xbf16>
    %cst_21 = arith.constant dense<0.000000e+00> : vector<16x128xf32>
    %43 = tpu.matmul %40, %42, %cst_21 {dimension_numbers = #tpu.dot_dimension_numbers<[1], [0], [0], [1], [0, 0, 1, 1], [], []>} : vector<16x8xbf16>, vector<8x128xbf16>, vector<16x128xf32> -> vector<16x128xf32>
    %44 = arith.addf %39, %43 : vector<16x128xf32>
    %c0_22 = arith.constant 0 : index
    %c0_23 = arith.constant 0 : index
    %c0_24 = arith.constant 0 : index
    %c0_25 = arith.constant 0 : index
    %45 = vector.load %arg3[%c0_22, %c0_23, %c0_24, %c0_25] : memref<1x1x18x8xbf16, #tpu.memory_space<vmem>>, vector<1x1x18x8xbf16>
    %46 = vector.shape_cast %45 : vector<1x1x18x8xbf16> to vector<18x8xbf16>
    %47 = arith.extf %46 : vector<18x8xbf16> to vector<18x8xf32>
    %48 = vector.broadcast %0 : vector<1x8xf32> to vector<18x8xf32>
    %49 = arith.mulf %47, %48 : vector<18x8xf32>
    %50 = vector.broadcast %1 : vector<1x8xf32> to vector<18x8xf32>
    %51 = arith.addf %49, %50 : vector<18x8xf32>
    %cst_26 = arith.constant 0.000000e+00 : f32
    %52 = vector.broadcast %cst_26 : f32 to vector<18x8xf32>
    %53 = arith.maximumf %51, %52 : vector<18x8xf32>
    %c1_i32_27 = arith.constant 1 : i32
    %54 = arith.addi %arg1, %c1_i32_27 : i32
    %c1_i32_28 = arith.constant 1 : i32
    %55 = arith.cmpi sge, %54, %c1_i32_28 : i32
    %c1_i32_29 = arith.constant 1 : i32
    %56 = arith.addi %arg1, %c1_i32_29 : i32
    %c17_i32_30 = arith.constant 17 : i32
    %57 = arith.cmpi slt, %56, %c17_i32_30 : i32
    %58 = arith.andi %55, %57 : i1
    %59 = vector.broadcast %58 : i1 to vector<18x1xi1>
    %60 = arith.andi %7, %59 : vector<18x1xi1>
    %cst_31 = arith.constant 0.000000e+00 : f32
    %61 = vector.shape_cast %60 : vector<18x1xi1> to vector<18x1xi1>
    %62 = vector.broadcast %61 : vector<18x1xi1> to vector<18x8xi1>
    %63 = vector.broadcast %cst_31 : f32 to vector<18x8xf32>
    %64 = arith.select %62, %53, %63 : vector<18x8xi1>, vector<18x8xf32>
    %65 = arith.truncf %64 : vector<18x8xf32> to vector<18x8xbf16>
    %66 = vector.extract_strided_slice %65 {offsets = [0, 0], sizes = [16, 8], strides = [1, 1]} : vector<18x8xbf16> to vector<16x8xbf16>
    %c3 = arith.constant 3 : index
    %c0_32 = arith.constant 0 : index
    %c0_33 = arith.constant 0 : index
    %67 = vector.load %arg7[%c3, %c0_32, %c0_33] : memref<9x8x128xbf16, #tpu.memory_space<vmem>>, vector<1x8x128xbf16>
    %68 = vector.shape_cast %67 : vector<1x8x128xbf16> to vector<8x128xbf16>
    %cst_34 = arith.constant dense<0.000000e+00> : vector<16x128xf32>
    %69 = tpu.matmul %66, %68, %cst_34 {dimension_numbers = #tpu.dot_dimension_numbers<[1], [0], [0], [1], [0, 0, 1, 1], [], []>} : vector<16x8xbf16>, vector<8x128xbf16>, vector<16x128xf32> -> vector<16x128xf32>
    %70 = arith.addf %44, %69 : vector<16x128xf32>
    %71 = vector.extract_strided_slice %65 {offsets = [1, 0], sizes = [16, 8], strides = [1, 1]} : vector<18x8xbf16> to vector<16x8xbf16>
    %c4 = arith.constant 4 : index
    %c0_35 = arith.constant 0 : index
    %c0_36 = arith.constant 0 : index
    %72 = vector.load %arg7[%c4, %c0_35, %c0_36] : memref<9x8x128xbf16, #tpu.memory_space<vmem>>, vector<1x8x128xbf16>
    %73 = vector.shape_cast %72 : vector<1x8x128xbf16> to vector<8x128xbf16>
    %cst_37 = arith.constant dense<0.000000e+00> : vector<16x128xf32>
    %74 = tpu.matmul %71, %73, %cst_37 {dimension_numbers = #tpu.dot_dimension_numbers<[1], [0], [0], [1], [0, 0, 1, 1], [], []>} : vector<16x8xbf16>, vector<8x128xbf16>, vector<16x128xf32> -> vector<16x128xf32>
    %75 = arith.addf %70, %74 : vector<16x128xf32>
    %76 = vector.extract_strided_slice %65 {offsets = [2, 0], sizes = [16, 8], strides = [1, 1]} : vector<18x8xbf16> to vector<16x8xbf16>
    %c5 = arith.constant 5 : index
    %c0_38 = arith.constant 0 : index
    %c0_39 = arith.constant 0 : index
    %77 = vector.load %arg7[%c5, %c0_38, %c0_39] : memref<9x8x128xbf16, #tpu.memory_space<vmem>>, vector<1x8x128xbf16>
    %78 = vector.shape_cast %77 : vector<1x8x128xbf16> to vector<8x128xbf16>
    %cst_40 = arith.constant dense<0.000000e+00> : vector<16x128xf32>
    %79 = tpu.matmul %76, %78, %cst_40 {dimension_numbers = #tpu.dot_dimension_numbers<[1], [0], [0], [1], [0, 0, 1, 1], [], []>} : vector<16x8xbf16>, vector<8x128xbf16>, vector<16x128xf32> -> vector<16x128xf32>
    %80 = arith.addf %75, %79 : vector<16x128xf32>
    %c0_41 = arith.constant 0 : index
    %c0_42 = arith.constant 0 : index
    %c0_43 = arith.constant 0 : index
    %c0_44 = arith.constant 0 : index
    %81 = vector.load %arg4[%c0_41, %c0_42, %c0_43, %c0_44] : memref<1x1x18x8xbf16, #tpu.memory_space<vmem>>, vector<1x1x18x8xbf16>
    %82 = vector.shape_cast %81 : vector<1x1x18x8xbf16> to vector<18x8xbf16>
    %83 = arith.extf %82 : vector<18x8xbf16> to vector<18x8xf32>
    %84 = vector.broadcast %0 : vector<1x8xf32> to vector<18x8xf32>
    %85 = arith.mulf %83, %84 : vector<18x8xf32>
    %86 = vector.broadcast %1 : vector<1x8xf32> to vector<18x8xf32>
    %87 = arith.addf %85, %86 : vector<18x8xf32>
    %cst_45 = arith.constant 0.000000e+00 : f32
    %88 = vector.broadcast %cst_45 : f32 to vector<18x8xf32>
    %89 = arith.maximumf %87, %88 : vector<18x8xf32>
    %c2_i32 = arith.constant 2 : i32
    %90 = arith.addi %arg1, %c2_i32 : i32
    %c1_i32_46 = arith.constant 1 : i32
    %91 = arith.cmpi sge, %90, %c1_i32_46 : i32
    %c2_i32_47 = arith.constant 2 : i32
    %92 = arith.addi %arg1, %c2_i32_47 : i32
    %c17_i32_48 = arith.constant 17 : i32
    %93 = arith.cmpi slt, %92, %c17_i32_48 : i32
    %94 = arith.andi %91, %93 : i1
    %95 = vector.broadcast %94 : i1 to vector<18x1xi1>
    %96 = arith.andi %7, %95 : vector<18x1xi1>
    %cst_49 = arith.constant 0.000000e+00 : f32
    %97 = vector.shape_cast %96 : vector<18x1xi1> to vector<18x1xi1>
    %98 = vector.broadcast %97 : vector<18x1xi1> to vector<18x8xi1>
    %99 = vector.broadcast %cst_49 : f32 to vector<18x8xf32>
    %100 = arith.select %98, %89, %99 : vector<18x8xi1>, vector<18x8xf32>
    %101 = arith.truncf %100 : vector<18x8xf32> to vector<18x8xbf16>
    %102 = vector.extract_strided_slice %101 {offsets = [0, 0], sizes = [16, 8], strides = [1, 1]} : vector<18x8xbf16> to vector<16x8xbf16>
    %c6 = arith.constant 6 : index
    %c0_50 = arith.constant 0 : index
    %c0_51 = arith.constant 0 : index
    %103 = vector.load %arg7[%c6, %c0_50, %c0_51] : memref<9x8x128xbf16, #tpu.memory_space<vmem>>, vector<1x8x128xbf16>
    %104 = vector.shape_cast %103 : vector<1x8x128xbf16> to vector<8x128xbf16>
    %cst_52 = arith.constant dense<0.000000e+00> : vector<16x128xf32>
    %105 = tpu.matmul %102, %104, %cst_52 {dimension_numbers = #tpu.dot_dimension_numbers<[1], [0], [0], [1], [0, 0, 1, 1], [], []>} : vector<16x8xbf16>, vector<8x128xbf16>, vector<16x128xf32> -> vector<16x128xf32>
    %106 = arith.addf %80, %105 : vector<16x128xf32>
    %107 = vector.extract_strided_slice %101 {offsets = [1, 0], sizes = [16, 8], strides = [1, 1]} : vector<18x8xbf16> to vector<16x8xbf16>
    %c7 = arith.constant 7 : index
    %c0_53 = arith.constant 0 : index
    %c0_54 = arith.constant 0 : index
    %108 = vector.load %arg7[%c7, %c0_53, %c0_54] : memref<9x8x128xbf16, #tpu.memory_space<vmem>>, vector<1x8x128xbf16>
    %109 = vector.shape_cast %108 : vector<1x8x128xbf16> to vector<8x128xbf16>
    %cst_55 = arith.constant dense<0.000000e+00> : vector<16x128xf32>
    %110 = tpu.matmul %107, %109, %cst_55 {dimension_numbers = #tpu.dot_dimension_numbers<[1], [0], [0], [1], [0, 0, 1, 1], [], []>} : vector<16x8xbf16>, vector<8x128xbf16>, vector<16x128xf32> -> vector<16x128xf32>
    %111 = arith.addf %106, %110 : vector<16x128xf32>
    %112 = vector.extract_strided_slice %101 {offsets = [2, 0], sizes = [16, 8], strides = [1, 1]} : vector<18x8xbf16> to vector<16x8xbf16>
    %c8 = arith.constant 8 : index
    %c0_56 = arith.constant 0 : index
    %c0_57 = arith.constant 0 : index
    %113 = vector.load %arg7[%c8, %c0_56, %c0_57] : memref<9x8x128xbf16, #tpu.memory_space<vmem>>, vector<1x8x128xbf16>
    %114 = vector.shape_cast %113 : vector<1x8x128xbf16> to vector<8x128xbf16>
    %cst_58 = arith.constant dense<0.000000e+00> : vector<16x128xf32>
    %115 = tpu.matmul %112, %114, %cst_58 {dimension_numbers = #tpu.dot_dimension_numbers<[1], [0], [0], [1], [0, 0, 1, 1], [], []>} : vector<16x8xbf16>, vector<8x128xbf16>, vector<16x128xf32> -> vector<16x128xf32>
    %116 = arith.addf %111, %115 : vector<16x128xf32>
    %c0_59 = arith.constant 0 : index
    %c0_60 = arith.constant 0 : index
    %117 = vector.load %arg8[%c0_59, %c0_60] : memref<1x128xf32, #tpu.memory_space<vmem>>, vector<1x128xf32>
    %118 = vector.broadcast %117 : vector<1x128xf32> to vector<16x128xf32>
    %119 = arith.addf %116, %118 : vector<16x128xf32>
    %120 = arith.truncf %119 : vector<16x128xf32> to vector<16x128xbf16>
    %c0_61 = arith.constant 0 : index
    %c0_62 = arith.constant 0 : index
    %c0_63 = arith.constant 0 : index
    %c0_64 = arith.constant 0 : index
    %121 = vector.load %arg9[%c0_61, %c0_62, %c0_63, %c0_64] : memref<1x1x16x128xbf16, #tpu.memory_space<vmem>>, vector<1x1x16x128xbf16>
    %122 = vector.shape_cast %121 : vector<1x1x16x128xbf16> to vector<16x128xbf16>
    %123 = vector.shape_cast %120 : vector<16x128xbf16> to vector<1x1x16x128xbf16>
    tpu.vector_store %arg9[%c0_61, %c0_62, %c0_63, %c0_64], %123 {strides = array<i32>} : memref<1x1x16x128xbf16, #tpu.memory_space<vmem>>, vector<1x1x16x128xbf16>,
    return
  }
  func.func @transform_0(%arg0: i32, %arg1: i32) -> (i32, i32, i32, i32) {
    %c0_i32 = arith.constant 0 : i32
    %0 = arith.addi %arg1, %c0_i32 : i32
    %c0_i32_0 = arith.constant 0 : i32
    %c0_i32_1 = arith.constant 0 : i32
    %c0_i32_2 = arith.constant 0 : i32
    return %arg0, %0, %c0_i32_0, %c0_i32_1 : i32, i32, i32, i32
  }
  func.func @transform_1(%arg0: i32, %arg1: i32) -> (i32, i32, i32, i32) {
    %c1_i32 = arith.constant 1 : i32
    %0 = arith.addi %arg1, %c1_i32 : i32
    %c0_i32 = arith.constant 0 : i32
    %c0_i32_0 = arith.constant 0 : i32
    %c0_i32_1 = arith.constant 0 : i32
    return %arg0, %0, %c0_i32, %c0_i32_0 : i32, i32, i32, i32
  }
  func.func @transform_2(%arg0: i32, %arg1: i32) -> (i32, i32, i32, i32) {
    %c2_i32 = arith.constant 2 : i32
    %0 = arith.addi %arg1, %c2_i32 : i32
    %c0_i32 = arith.constant 0 : i32
    %c0_i32_0 = arith.constant 0 : i32
    %c0_i32_1 = arith.constant 0 : i32
    return %arg0, %0, %c0_i32, %c0_i32_0 : i32, i32, i32, i32
  }
  func.func @transform_3(%arg0: i32, %arg1: i32) -> (i32, i32) {
    %c0_i32 = arith.constant 0 : i32
    %c0_i32_0 = arith.constant 0 : i32
    %c0_i32_1 = arith.constant 0 : i32
    return %c0_i32, %c0_i32_0 : i32, i32
  }
  func.func @transform_4(%arg0: i32, %arg1: i32) -> (i32, i32) {
    %c0_i32 = arith.constant 0 : i32
    %c0_i32_0 = arith.constant 0 : i32
    %c0_i32_1 = arith.constant 0 : i32
    return %c0_i32, %c0_i32_0 : i32, i32
  }
  func.func @transform_5(%arg0: i32, %arg1: i32) -> (i32, i32, i32) {
    %c0_i32 = arith.constant 0 : i32
    %c0_i32_0 = arith.constant 0 : i32
    %c0_i32_1 = arith.constant 0 : i32
    %c0_i32_2 = arith.constant 0 : i32
    return %c0_i32, %c0_i32_0, %c0_i32_1 : i32, i32, i32
  }
  func.func @transform_6(%arg0: i32, %arg1: i32) -> (i32, i32) {
    %c0_i32 = arith.constant 0 : i32
    %c0_i32_0 = arith.constant 0 : i32
    %c0_i32_1 = arith.constant 0 : i32
    return %c0_i32, %c0_i32_0 : i32, i32
  }
  func.func @transform_7(%arg0: i32, %arg1: i32) -> (i32, i32, i32, i32) {
    %c0_i32 = arith.constant 0 : i32
    %c0_i32_0 = arith.constant 0 : i32
    %c0_i32_1 = arith.constant 0 : i32
    return %arg0, %arg1, %c0_i32, %c0_i32_0 : i32, i32, i32, i32
  }
}

</mosaic_0001>

<bundles_post_ra>
// kernel: tpu_custom_call.1
= control target key start
LH: loop header
LB: loop body
LE: loop exit
PB: predicated region body
PF: predicated region fallthrough
CT: control target
= control target key end

     0   :  { %12 = vsyncpa [#allocation3], 0  ;;  %s1904_s0 = inlined_call_operand.vmem [shape: bf16[2,18,18,8], index: 0, kind: input, shape index: {}]   ;;  %s1905_s1 = inlined_call_operand.vmem [shape: bf16[2,18,18,8], index: 1, kind: input, shape index: {}]   ;;  %s1906_s2 = inlined_call_operand.vmem [shape: bf16[2,18,18,8], index: 2, kind: input, shape index: {}]   ;;  %s1907_s3 = inlined_call_operand.vmem [shape: f32[1,8], index: 3, kind: input, shape index: {}]   ;;  %s1908_s4 = inlined_call_operand.vmem [shape: f32[1,8], index: 4, kind: input, shape index: {}]   ;;  %s1909_s5 = inlined_call_operand.vmem [shape: bf16[9,8,128], index: 5, kind: input, shape index: {}]   ;;  %s1910_s6 = inlined_call_operand.vmem [shape: f32[1,128], index: 6, kind: input, shape index: {}]   ;;  %s1911_s7 = inlined_call_operand.hbm [shape: bf16[2,16,16,128], index: 7, kind: output, shape index: {}]  }
   0x1   :  { %14 = vsyncpa [#allocation3 + $0x1], 0  ;;  %s1544_s24 = smov 0   ;;  %s1546_s25 = smov 0  }
   0x2   :  { %s1548_s26 = smov 0   ;;  %s1550_s27 = smov 0  }
   0x3   :  { %s1552_s28 = smov 0   ;;  %s1554_s29 = smov 0  }
   0x4   :  { %s1556_s30 = smov 0   ;;  %s1558_s8 = smov 0  }
   0x5 LB: > { %s1193_s9 = sadd.s32 4294967295, %s1497_s8   ;;  %s1194_s10 = sadd.s32 4294967294, %s1497_s8   ;;  %s1497_s8 = sphi %s1558_s8, %s20_s8   ;;  %s1493_s30 = sphi %s1556_s30, %s1938_s30   ;;  %s1489_s29 = sphi %s1554_s29, %s1937_s29   ;;  %s1485_s28 = sphi %s1552_s28, %s1936_s28   ;;  %s1481_s27 = sphi %s1550_s27, %s1935_s27   ;;  %s1477_s26 = sphi %s1548_s26, %s1934_s26   ;;  %s1473_s25 = sphi %s1546_s25, %s1933_s25   ;;  %s1469_s24 = sphi %s1544_s24, %s1932_s24  }
   0x6   : > { %s29_s11 = sadd.s32 1, %s1489_s29  ;;  %s32_s12 = sadd.s32 1, %s1493_s30 }
   0x7   : > { %p30_p0 = scmp.ge.s32.totalorder %s29_s11, 16  ;;  %p223_p1 = scmp.ne.s32.totalorder %s1477_s26, %s1473_s25 }
   0x8   : > { %p224_p2 = scmp.eq.s32.totalorder %s1193_s9, 31  ;;  %p229_p5 = scmp.ne.s32.totalorder %s1473_s25, %s1469_s24 }
   0x9   : > { %s1940_s11 = smov (%p30_p0, %s29_s11), 0  ;;  %s1942_s12 = smov (!%p30_p0, %s32_s12), %s1493_s30 }
   0xa   : > { %1914 = sst [smem:[#allocation5_spill]] %s1940_s11  ;;  %s209_s13 = ssub.s32 %s1489_s29, %s1940_s11 }
   0xb   : > { %p1595_p3 = por %p224_p2, %p223_p1  ;;  %p34_p4 = scmp.ge.s32.totalorder %s1942_s12, 2 }
   0xc   : > { %p230_p6 = scmp.eq.s32.totalorder %s1194_s10, 31  ;;  %p1197_p7 = scmp.ge.s32.totalorder %s1497_s8, 1 }
   0xd   : > { %s1944_s12 = smov (%p34_p4, %s1942_s12), 0  ;;  %p300_p9 = scmp.lt.s32.totalorder %s1497_s8, 33 }
   0xe   : > { %1916 = sst [smem:[#allocation6_spill]] %s1944_s12  ;;  %p1604_p8 = por %p230_p6, %p229_p5 }
   0xf   : > { %s208_s16 = ssub.s32 %s1493_s30, %s1944_s12  ;;  %s213_s17 = sadd.s32 1, %s1477_s26 }
  0x10   : > { %s210_s18 = sor.u32 %s209_s13, %s208_s16  ;;  %p301_p10 = pnand %p1197_p7, %p300_p9 }
  0x11   : > { %p211_p11 = scmp.eq.s32.totalorder %s210_s18, 0  ;;  %v1205_v0 = vld [vmem:[%s1909_s5 + $0x4] sm:$0xf] (!%p301_p10)  ;;  %vm471_vm0 = vcmask (!%p301_p10), 1043456   ;;  %v451_v1 = vld [vmem:[%s1909_s5] sm:$0xf] (!%p301_p10)  ;;  %v390_v5 = vlaneseq (!%p301_p10) }
  0x12   : > { %304 = sbr.rel (%p301_p10) target bundleno = 319 (0x13f), region = 48  ;;  %v1499_v2 = vmov (!%p301_p10), 0.0   ;;  %v473_v3 = vsel (!%p301_p10), %vm471_vm0, %v1205_v0, 0  ;;  %v519_v4 = vsel (!%p301_p10), %vm471_vm0, %v451_v1, 0  ;;  %p356_p12 = scmp.lt.s32.totalorder (!%p301_p10), %s1485_s28, 1  ;;  %vm1500_vm1 = vmmov (!%p301_p10), 0  }
  0x13   : > { %s1613_s19 = scalar_select %p211_p11, %s1477_s26, %s213_s17  }
  0x14   : > { %1270 = vmatprep.subr.bf16.mxu0 (!%p301_p10), %v1499_v2  ;;  %1276 = vmatprep.subr.bf16.mxu1 (!%p301_p10), %v1499_v2  ;;  %p358_p13 = scmp.lt.s32.totalorder (!%p301_p10), %s1481_s27, 17  ;;  %p430_p0 = scmp.ge.s32.totalorder (!%p301_p10), %s1481_s27, 1  ;;  %v1642_v6 = vshrl.u32 (!%p301_p10), %v390_v5, 7  ;;  %v1655_v9 = vld [vmem:[%s1907_s3] ss:$0 sm:$0xff] (!%p301_p10)  ;;  %vm467_vm7 = vcmask (!%p301_p10), 64512  }
  0x15   : > { %1271 = vmatpush3.bf16.msra.mxu0 (!%p301_p10), %v473_v3  ;;  %1277 = vmatpush3.bf16.msra.mxu1 (!%p301_p10), %v519_v4  ;;  %s365_s17 = sadd.s32 (!%p301_p10), 1, %s1481_s27  ;;  %v1669_v15 = vld [vmem:[%s1908_s4] ss:$0 sm:$0xff] (!%p301_p10)  ;;  %v1211_v23 = vld [vmem:[%s1909_s5 + $0xc] sm:$0xf] (!%p301_p10)  ;;  %vm566_vm13 = vcmask (!%p301_p10), 1046528  }
  0x16   : > { %1272 = vmatprep.mubr.msk.bf16.mxu0 (!%p301_p10), %vm1500_vm1, %v1499_v2  ;;  %1278 = vmatprep.mubr.msk.bf16.mxu1 (!%p301_p10), %vm1500_vm1, %v1499_v2  ;;  %p432_p1 = pnand (!%p301_p10), %p430_p0, %p358_p13  ;;  %p368_p2 = scmp.lt.s32.totalorder (!%p301_p10), %s365_s17, 17  ;;  %v1650_v7 = vadd.s32 (!%p301_p10), 16, %v1642_v6  ;;  %vm394_vm2 = vcmp.ge.s32.totalorder (!%p301_p10), %v1642_v6, 1  ;;  %v662_v31 = vsel (!%p301_p10), %vm471_vm0, %v1211_v23, 0  ;;  %vm454_vm10 = vsmask.f32 (!%p301_p10), 7424 }
  0x17   : > { %1282 = vmatprep.subr.bf16.mxu0 (!%p301_p10), %v1499_v2  ;;  %1288 = vmatprep.subr.bf16.mxu1 (!%p301_p10), %v1499_v2  ;;  %p635_p4 = scmp.ge.s32.totalorder (!%p301_p10), %s365_s17, 1  ;;  %v1208_v52 = vld [vmem:[%s1909_s5 + $0x8] sm:$0xf] (!%p301_p10)  ;;  %v1215_v61 = vld [vmem:[%s1909_s5 + $0x14] sm:$0xf] (!%p301_p10) }
  0x18   : > { %vm399_vm4 = vcmp.lt.s32.totalorder (!%p301_p10), %v1650_v7, 17  ;;  %v574_v1 = vsel (!%p301_p10), %vm471_vm0, %v1208_v52, 0  ;;  %v1213_v23 = vld [vmem:[%s1909_s5 + $0x10] sm:$0xf] (!%p301_p10) }
  0x19   : > { %s357_s9 = scalar_select %p356_p12, %s1485_s28, 1 }
  0x1a   : > { %s359_s10 = scalar_select %p358_p13, %s1481_s27, 17 }
  0x1b   : > { %s1638_s13 = smul.u32 54, %s357_s9  ;;  %p1659_p5 = pnand %p635_p4, %p368_p2 }
  0x1c   : > { %s1324_s16 = smul.u32 3, %s359_s10 }
  0x1d   : > { %s1204_s18 = scalar_select %p432_p1, 0, 1 }
  0x1e   : > { %s362_s20 = sadd.s32 %s1638_s13, %s1324_s16  ;;  %s1228_s16 = sshll.u32 %s1481_s27, 1 }
  0x1f   : > { %s1199_s21 = sshll.u32 %s362_s20, 2  ;;  %v435_v8 = vstv %s1204_s18  ;;  %s1664_s18 = sadd.s32 2, %s1481_s27 }
  0x20   : > { %s364_s12 = scalar_lea.vmem %s1904_s0, %s1199_s21  ;;  %vm436_vm3 = vcmp.eq.s32.totalorder %v435_v8, 1  ;;  %p841_p6 = scmp.ge.s32.totalorder %s1664_s18, 1 }
  0x21   : > { %v1236_v10 = vld [vmem:[%s364_s12] sm:$0xff]   ;;  %v405_v11 = vld [vmem:[%s364_s12 + $0x8] sm:$0x1]  ;;  %s369_s10 = scalar_select %p368_p2, %s365_s17, 17  ;;  %vm1687_vm5 = vmand %vm394_vm2, %vm436_vm3 }
  0x22   : > { %v1237_v12 = vunpack.c.l.bf16 %v1236_v10  ;;  %v1238_v13 = vunpack.c.h.bf16 %v1236_v10  ;;  %v408_v14 = vunpack.c.l.bf16 %v405_v11  ;;  %s1210_s17 = scalar_select %p1659_p5, 0, 1  ;;  %vm1697_vm6 = vmand %vm399_vm4, %vm436_vm3 }
  0x23   : > { %s1326_s12 = smul.u32 3, %s369_s10  ;;  %p379_p7 = scmp.lt.s32.totalorder %s1664_s18, 17 }
  0x24   : > { %v415_v16 = vmul.f32 %v1237_v12, %v1655_v9  ;;  %v416_v17 = vmul.f32 %v1238_v13, %v1655_v9  ;;  %v417_v18 = vmul.f32 %v1655_v9, %v408_v14  ;;  %v640_v25 = vstv %s1210_s17 }
  0x25   : > { %s372_s21 = sadd.s32 %s1326_s12, %s1638_s13  ;;  %p1708_p9 = pnand %p841_p6, %p379_p7  ;;  %vm641_vm8 = vcmp.eq.s32.totalorder %v640_v25, 1  ;;  %v780_v12 = vsel %vm471_vm0, %v1215_v61, 0 }
  0x26   : > { %v424_v19 = vadd.f32 %v1669_v15, %v415_v16  ;;  %v425_v20 = vadd.f32 %v1669_v15, %v416_v17  ;;  %v426_v21 = vadd.f32 %v1669_v15, %v417_v18  ;;  %s1200_s9 = sshll.u32 %s372_s21, 2  ;;  %s1946_s18 = smov (!%p379_p7, %s1664_s18), 17  ;;  %vm1743_vm9 = vmand %vm394_vm2, %vm641_vm8 }
  0x27   : > { %s374_s20 = scalar_lea.vmem %s1905_s1, %s1200_s9  ;;  %s1327_s12 = smul.u32 3, %s1946_s18  ;;  %vm1755_vm11 = vmand %vm399_vm4, %vm641_vm8 }
  0x28   : > { %v427_v26 = vmax.f32 %v424_v19, 0.0  ;;  %v428_v27 = vmax.f32 %v425_v20, 0.0  ;;  %v429_v28 = vmax.f32 %v426_v21, 0.0  ;;  %v1240_v29 = vld [vmem:[%s374_s20] sm:$0xff]   ;;  %v621_v30 = vld [vmem:[%s374_s20 + $0x8] sm:$0x1] }
  0x29   : > { %v1241_v32 = vunpack.c.l.bf16 %v1240_v29  ;;  %v1242_v33 = vunpack.c.h.bf16 %v1240_v29  ;;  %v624_v34 = vunpack.c.l.bf16 %v621_v30  ;;  %s1217_s17 = scalar_select %p1708_p9, 0, 1 }
  0x2a   : > { %v446_v35 = vsel %vm1687_vm5, %v427_v26, 0.0  ;;  %v447_v36 = vsel %vm436_vm3, %v428_v27, 0.0  ;;  %v448_v37 = vsel %vm1697_vm6, %v429_v28, 0.0  ;;  %s383_s21 = sadd.s32 %s1327_s12, %s1638_s13  ;;  %s353_s9 = sand.u32 1, %s1473_s25  }
  0x2b   : > { %v1721_v38 = vpack.c.bf16 %v447_v36, %v446_v35  ;;  %v1723_v39 = vpack.c.bf16 %v448_v37, %v448_v37  ;;  %v625_v40 = vmul.f32 %v1241_v32, %v1655_v9  ;;  %v626_v41 = vmul.f32 %v1242_v33, %v1655_v9  ;;  %s1201_s18 = sshll.u32 %s383_s21, 2  ;;  %s1229_s20 = sshll.u32 %s1485_s28, 5 }
  0x2c   : > { %v627_v42 = vmul.f32 %v1655_v9, %v624_v34  ;;  %s385_s10 = scalar_lea.vmem %s1906_s2, %s1201_s18  ;;  %v846_v58 = vstv %s1217_s17  ;;  %v724_v32 = vsel %vm471_vm0, %v1213_v23, 0  ;;  %s1063_s11 = sadd.s32 %s1229_s20, %s1228_s16 }
  0x2d   : > { %v456_v43 = vshrl.u32 %v1721_v38, 16  ;;  %v458_v44 = vshll.u32 %v1721_v38, 16  ;;  %v463_v45 = vshll.u32 %v1723_v39, 16  ;;  %1279 = vmatmul.mubr.msk.bf16.vlgmr.msra.gmra.mrb[0].mxu1 %vm467_vm7, %v1721_v38  ;;  %v628_v46 = vadd.f32 %v1669_v15, %v625_v40  ;;  %v1244_v57 = vld [vmem:[%s385_s10] sm:$0xff]   ;;  %v827_v59 = vld [vmem:[%s385_s10 + $0x8] sm:$0x1] }
  0x2e   : > { %1289 = vmatpush3.bf16.msra.mxu1 %v662_v31  ;;  %1290 = vmatprep.mubr.msk.bf16.mxu1 %vm1500_vm1, %v1499_v2  ;;  %v629_v47 = vadd.f32 %v1669_v15, %v626_v41  ;;  %v630_v49 = vadd.f32 %v1669_v15, %v627_v42  ;;  %v1245_v62 = vunpack.c.l.bf16 %v1244_v57  ;;  %v1246_v63 = vunpack.c.h.bf16 %v1244_v57  ;;  %v1220_v31 = vld [vmem:[%s1909_s5 + $0x1c] sm:$0xf]  ;;  %s1198_s10 = sshll.u32 %s353_s9, 3  ;;  %s1230_s13 = sshll.u32 %s1063_s11, 6 }
  0x2f   : > { %v460_v50 = vrot.slane %v458_v44, 1  ;;  %v465_v51 = vrot.slane %v463_v45, 1  ;;  %1300 = vmatprep.subr.bf16.mxu1 %v1499_v2  ;;  %v631_v54 = vmax.f32 %v628_v46, 0.0  ;;  %v830_v0 = vunpack.c.l.bf16 %v827_v59  ;;  %v1218_v44 = vld [vmem:[%s1909_s5 + $0x18] sm:$0xf]  ;;  %s355_s21 = scalar_lea.vmem [#allocation2], %s1198_s10  ;;  %s1848_s28 = scalar_lea.hbm %s1911_s7, %s1230_s13 }
  0x30   : > { %v632_v55 = vmax.f32 %v629_v47, 0.0  ;;  %v633_v56 = vmax.f32 %v630_v49, 0.0  ;;  %v831_v11 = vmul.f32 %v1245_v62, %v1655_v9  ;;  %vm847_vm12 = vcmp.eq.s32.totalorder %v846_v58, 1  ;;  %s1066_s18 = sshll.u32 %s355_s21, 4  ;;  %s1852_s23 = scalar_lea.sflag [#allocation3], %s353_s9  ;;  %s1850_s18 = int_to_ptr.vmem [resolvable:$true] %s1066_s18 }
  0x31   : > { %v461_v60 = vor.u32 %v460_v50, %v456_v43  ;;  %v651_v3 = vsel %vm1743_vm9, %v631_v54, 0.0  ;;  %v832_v14 = vmul.f32 %v1246_v63, %v1655_v9  ;;  %v833_v16 = vmul.f32 %v1655_v9, %v830_v0  ;;  %vm1788_vm14 = vmand %vm394_vm2, %vm847_vm12  ;;  %s1403_s10 = scalar_lea.vmem %s1850_s18, 128  ;;  %s1501_s16 = smov [#allocation2]  }
  0x32   : > { %v652_v4 = vsel %vm641_vm8, %v632_v55, 0.0  ;;  %v653_v5 = vsel %vm1755_vm11, %v633_v56, 0.0  ;;  %v567_v17 = vrot.slane %v1721_v38, 1  ;;  %v568_v18 = vrot.slane %v1723_v39, 1  ;;  %vm850_vm15 = vmand %vm399_vm4, %vm847_vm12  ;;  %p1404_p10 = scmp.ne.s32.totalorder %s1850_s18, %s1403_s10  ;;  %s1407_s20 = sshll.u32 %s1501_s16, 4  ;;  %s1408_s20 = int_to_ptr.vmem [resolvable:$false] %s1407_s20 }
  0x33   : > { %v466_v8 = vsel %vm454_vm10, %v461_v60, %v465_v51  ;;  %v654_v10 = vpack.c.bf16 %v652_v4, %v651_v3  ;;  %v655_v13 = vpack.c.bf16 %v653_v5, %v653_v5  ;;  %v834_v20 = vadd.f32 %v1669_v15, %v831_v11  ;;  %v1222_v51 = vld [vmem:[%s1909_s5 + $0x20] sm:$0xf]  ;;  %s1409_s11 = scalar_lea.vmem %s1408_s20, 256  ;;  %p1410_p13 = scmp.lt.s32.totalorder %s1850_s18, %s1408_s20 }
  0x34   : > { %1273 = vmatmul.mubr.msk.bf16.vlgmr.msra.gmra.mrb[0].mxu0 %vm467_vm7, %v466_v8  ;;  %v835_v21 = vadd.f32 %v1669_v15, %v832_v14  ;;  %v836_v22 = vadd.f32 %v1669_v15, %v833_v16  ;;  %v569_v28 = vsel %vm566_vm13, %v567_v17, %v568_v18  ;;  %v930_v39 = vsel %vm471_vm0, %v1220_v31, 0  ;;  %p1405_p11 = pnand %p1404_p10, %p1595_p3  ;;  %p1411_p0 = scmp.lt.s32.totalorder %s1409_s11, %s1403_s10 }
  0x35   : > { %1283 = vmatpush3.bf16.msra.mxu0 %v574_v1  ;;  %1284 = vmatprep.mubr.msk.bf16.mxu0 %vm1500_vm1, %v1499_v2  ;;  %v711_v19 = vshll.u32 %v654_v10, 16  ;;  %v773_v24 = vrot.slane %v654_v10, 1  ;;  %v774_v25 = vrot.slane %v655_v13, 1  ;;  %v716_v6 = vshll.u32 %v655_v13, 16 }
  0x36   : > { %1294 = vmatprep.subr.bf16.mxu0 %v1499_v2  ;;  %1291 = vmatmul.mubr.msk.bf16.vlgmr.msra.gmra.mrb[4].mxu1 %vm467_vm7, %v654_v10  ;;  %v837_v26 = vmax.f32 %v834_v20, 0.0  ;;  %v838_v27 = vmax.f32 %v835_v21, 0.0  ;;  %v839_v15 = vmax.f32 %v836_v22, 0.0  ;;  %v709_v29 = vshrl.u32 %v654_v10, 16  ;;  %p1406_p12 = pneg %p1405_p11  ;;  %p1412_p1 = por %p1411_p0, %p1410_p13 }
  0x37   : > { %1301 = vmatpush3.bf16.msra.mxu1 %v780_v12  ;;  %1302 = vmatprep.mubr.msk.bf16.mxu1 %vm1500_vm1, %v1499_v2  ;;  %v713_v30 = vrot.slane %v711_v19, 1  ;;  %v775_v35 = vsel %vm566_vm13, %v773_v24, %v774_v25  ;;  %v718_v38 = vrot.slane %v716_v6, 1  ;;  %v868_v49 = vsel %vm471_vm0, %v1218_v44, 0 }
  0x38   : > { %1312 = vmatprep.subr.bf16.mxu1 %v1499_v2  ;;  %v857_v7 = vsel %vm1788_vm14, %v837_v26, 0.0  ;;  %v858_v33 = vsel %vm847_vm12, %v838_v27, 0.0  ;;  %v859_v34 = vsel %vm850_vm15, %v839_v15, 0.0  ;;  %v986_v52 = vsel %vm471_vm0, %v1222_v51, 0  ;;  %p1413_p2 = pnand %p1412_p1, %p1406_p12 }
  0x39   : > { %v860_v36 = vpack.c.bf16 %v858_v33, %v857_v7  ;;  %v861_v37 = vpack.c.bf16 %v859_v34, %v859_v34  ;;  %v714_v40 = vor.u32 %v713_v30, %v709_v29 }
  0x3b   : > { %v915_v41 = vshrl.u32 %v860_v36, 16  ;;  %v917_v42 = vshll.u32 %v860_v36, 16  ;;  %v922_v43 = vshll.u32 %v861_v37, 16  ;;  %v719_v47 = vsel %vm454_vm10, %v714_v40, %v718_v38 }
  0x3c   : > { %1285 = vmatmul.mubr.msk.bf16.vlgmr.msra.gmra.mrb[4].mxu0 %vm467_vm7, %v569_v28  ;;  %v979_v53 = vrot.slane %v860_v36, 1  ;;  %v980_v54 = vrot.slane %v861_v37, 1 }
  0x3d   : > { %1295 = vmatpush3.bf16.msra.mxu0 %v724_v32  ;;  %1296 = vmatprep.mubr.msk.bf16.mxu0 %vm1500_vm1, %v1499_v2  ;;  %v919_v45 = vrot.slane %v917_v42, 1  ;;  %v924_v46 = vrot.slane %v922_v43, 1 }
  0x3e   : > { %1306 = vmatprep.subr.bf16.mxu0 %v1499_v2  ;;  %1303 = vmatmul.mubr.msk.bf16.vlgmr.msra.gmra.mrb[8].mxu1 %vm467_vm7, %v775_v35  ;;  %v981_v55 = vsel %vm566_vm13, %v979_v53, %v980_v54 }
  0x3f   : > { %1313 = vmatpush3.bf16.msra.mxu1 %v930_v39  ;;  %1314 = vmatprep.mubr.msk.bf16.mxu1 %vm1500_vm1, %v1499_v2  ;;  %v920_v48 = vor.u32 %v919_v45, %v915_v41  ;;  %v1224_v41 = vld [vmem:[%s1910_s6] ss:$0 sm:$0xff] }
  0x41   : > { %v925_v50 = vsel %vm454_vm10, %v920_v48, %v924_v46 }
  0x44   : > { %1297 = vmatmul.mubr.msk.bf16.vlgmr.msra.gmra.mrb[8].mxu0 %vm467_vm7, %v719_v47 }
  0x45   : > { %1307 = vmatpush3.bf16.msra.mxu0 %v868_v49  ;;  %1308 = vmatprep.mubr.msk.bf16.mxu0 %vm1500_vm1, %v1499_v2 }
  0x46   : > { %1318 = vmatprep.subr.bf16.mxu0 %v1499_v2  ;;  %1315 = vmatmul.mubr.msk.bf16.vlgmr.msra.gmra.mrb[12].mxu1 %vm467_vm7, %v925_v50 }
  0x4c   : > { %1309 = vmatmul.mubr.msk.bf16.vlgmr.msra.gmra.mrb[12].mxu0 %vm467_vm7, %v860_v36 }
  0x4d   : > { %1319 = vmatpush3.bf16.msra.mxu0 %v986_v52  ;;  %1320 = vmatprep.mubr.msk.bf16.mxu0 %vm1500_vm1, %v1499_v2 }
  0x54   : > { %1321 = vmatmul.mubr.msk.bf16.vlgmr.msra.gmra.mrb[16].mxu0 %vm467_vm7, %v981_v55 }
 0x100   : > { %v555_v56 = vpop.f32.mrb[0].mxu1 }
 0x101   : > { %v1280_v57 = vpop.f32.mrb[1].mxu1 }
 0x102   : > { %v558_v58 = vpop.f32.mrb[2].mxu1 }
 0x103   : > { %v1281_v59 = vpop.f32.mrb[3].mxu1 }
 0x107   : > { %v509_v60 = vpop.f32.mrb[0].mxu0 }
 0x108   : > { %v556_v61 = vadd.f32 %v555_v56, %v509_v60  ;;  %v1274_v62 = vpop.f32.mrb[1].mxu0 }
 0x109   : > { %v512_v63 = vpop.f32.mrb[2].mxu0  ;;  %v698_v0 = vpop.f32.mrb[4].mxu1 }
 0x10a   : > { %v559_v1 = vadd.f32 %v558_v58, %v512_v63  ;;  %v1275_v3 = vpop.f32.mrb[3].mxu0  ;;  %v1292_v4 = vpop.f32.mrb[5].mxu1 }
 0x10b   : > { %v701_v5 = vpop.f32.mrb[6].mxu1 }
 0x10c   : > { %v1293_v2 = vpop.f32.mrb[7].mxu1 }
 0x10f   : > { %v610_v8 = vpop.f32.mrb[4].mxu0 }
 0x110   : > { %v617_v10 = vadd.f32 %v610_v8, %v556_v61  ;;  %v1286_v11 = vpop.f32.mrb[5].mxu0 }
 0x111   : > { %v613_v12 = vpop.f32.mrb[6].mxu0  ;;  %v816_v13 = vpop.f32.mrb[8].mxu1 }
 0x112   : > { %v618_v14 = vadd.f32 %v613_v12, %v559_v1  ;;  %v705_v16 = vadd.f32 %v698_v0, %v617_v10  ;;  %v1287_v17 = vpop.f32.mrb[7].mxu0  ;;  %v1304_v18 = vpop.f32.mrb[9].mxu1 }
 0x113   : > { %v819_v19 = vpop.f32.mrb[10].mxu1 }
 0x114   : > { %v706_v20 = vadd.f32 %v701_v5, %v618_v14  ;;  %v1305_v21 = vpop.f32.mrb[11].mxu1 }
 0x117   : > { %v760_v9 = vpop.f32.mrb[8].mxu0 }
 0x118   : > { %v767_v22 = vadd.f32 %v760_v9, %v705_v16  ;;  %v1298_v23 = vpop.f32.mrb[9].mxu0 }
 0x119   : > { %v763_v24 = vpop.f32.mrb[10].mxu0  ;;  %v966_v25 = vpop.f32.mrb[12].mxu1 }
 0x11a   : > { %v768_v6 = vadd.f32 %v763_v24, %v706_v20  ;;  %v823_v26 = vadd.f32 %v816_v13, %v767_v22  ;;  %v1299_v27 = vpop.f32.mrb[11].mxu0  ;;  %v1316_v15 = vpop.f32.mrb[13].mxu1 }
 0x11b   : > { %v969_v28 = vpop.f32.mrb[14].mxu1 }
 0x11c   : > { %v824_v29 = vadd.f32 %v819_v19, %v768_v6  ;;  %v1317_v30 = vpop.f32.mrb[15].mxu1 }
 0x11f   : > { %v904_v31 = vpop.f32.mrb[12].mxu0 }
 0x120   : > { %v911_v32 = vadd.f32 %v904_v31, %v823_v26  ;;  %v1310_v7 = vpop.f32.mrb[13].mxu0 }
 0x121   : > { %v907_v33 = vpop.f32.mrb[14].mxu0 }
 0x122   : > { %v912_v34 = vadd.f32 %v907_v33, %v824_v29  ;;  %v973_v35 = vadd.f32 %v966_v25, %v911_v32  ;;  %v1311_v36 = vpop.f32.mrb[15].mxu0 }
 0x124   : > { %v974_v37 = vadd.f32 %v969_v28, %v912_v34 }
 0x127   : > { %v1022_v38 = vpop.f32.mrb[16].mxu0 }
 0x128   : > { %v1029_v39 = vadd.f32 %v1022_v38, %v973_v35  ;;  %v1322_v40 = vpop.f32.mrb[17].mxu0 }
 0x129   : > { %v1025_v42 = vpop.f32.mrb[18].mxu0 }
 0x12a   : > { %v1030_v43 = vadd.f32 %v1025_v42, %v974_v37  ;;  %v1323_v44 = vpop.f32.mrb[19].mxu0  ;;  %v1038_v45 = vadd.f32 %v1224_v41, %v1029_v39 }
 0x12c   : > { %v1039_v46 = vadd.f32 %v1224_v41, %v1030_v43 }
 0x12e   : > { %v1250_v47 = vpack.c.bf16 %v1039_v46, %v1038_v45 }
 0x130   : > { %1251 = vst [vmem:[%s355_s21] sm:$0xff] %v1250_v47  }
 0x131   : > { %1416 = shalt.err (!%p1413_p2)
}
 0x132   : > { %s1417_s9 = scalar_lea.hbm %s1848_s28, 128  ;;  %s1421_s21 = scalar_lea.hbm %s1911_s7, 4096 }
 0x133   : > { %p1418_p4 = scmp.ne.s32.totalorder %s1848_s28, %s1417_s9  ;;  %p1422_p7 = scmp.lt.u32.totalorder %s1848_s28, %s1911_s7 }
 0x134   : > { %p1423_p9 = scmp.lt.u32.totalorder %s1421_s21, %s1417_s9  ;;  %p1425_p11 = scmp.lt.u32.totalorder %s1417_s9, %s1848_s28 }
 0x135   : > { %p1419_p5 = pnand %p1418_p4, %p1595_p3 }
 0x136   : > { %p1424_p10 = por %p1423_p9, %p1422_p7 }
 0x137   : > { %p1420_p6 = pneg %p1419_p5 }
 0x138   : > { %p1426_p12 = por %p1425_p11, %p1424_p10 }
 0x13a   : > { %p1427_p13 = pnand %p1426_p12, %p1420_p6 }
 0x13c   : > { %1430 = shalt.err (!%p1427_p13)
}
 0x13d   : > { %s1502_s27 = smov 64   ;;  %s1503_s10 = smov 4  }
 0x13e   : > { %1328 = dma.vmem_to_hbm [thread:$0]  (%p1595_p3), %s1850_s18, 128, %s1848_s28, %s1852_s23, %s1502_s27, %s1502_s27, %s1503_s10  }
 0x13f PF: > { %p1334_p0 = scmp.ge.s32.totalorder %s1497_s8, 2  ;;  %s1081_s16 = sand.u32 1, %s1469_s24  }
 0x140   : > { %s1082_s20 = scalar_lea.sflag [#allocation3], %s1081_s16 }
 0x141   : > { %p1331_p1 = pnand %p1334_p0, %p1604_p8 }
 0x143   : > { %1464 = dma.done.wait (!%p1331_p1), %s1082_s20, 128  }
 0x144   : > { %1466 = vsyncadd (!%p1331_p1), %s1082_s20, 4294967168  ;;  %s20_s8 = sadd.s32 1, %s1497_s8   ;;  %s1930_s14 = sld [smem:[#allocation5_spill]] }
 0x145   : > { %p17_p2 = scmp.ge.s32.totalorder %s20_s8, 34   ;;  %s1931_s18 = sld [smem:[#allocation6_spill]] }
 0x146   : > { %s1932_s24 = smov %s1473_s25  ;;  %s1933_s25 = smov %s1477_s26 }
 0x147   : > { %s1934_s26 = smov %s1613_s19  ;;  %s1935_s27 = smov %s1489_s29 }
 0x148   : > { %s1936_s28 = smov %s1493_s30  ;;  %19 = sbr.rel (!%p17_p2) target bundleno = 5 (0x5), region = 97 }
 0x14a   : > { %s1937_s29 = smov %s1930_s14 }
 0x14b   : > { %s1938_s30 = smov %s1931_s18 }
 0x14f   :  { %1087 = vsyncpa [#allocation3], 1 }
 0x150   :  { %1089 = vsyncpa [#allocation3 + $0x1], 1 }

</bundles_post_ra>
